<compile_context>
chip_gen: v6e
topology: v6e:2x2x1
jax: 0.10.0
libtpu: 0.0.40
codegen_flags: <defaults>
</compile_context>

<pallas_src>
import math

import jax
import jax.numpy as jnp
from jax.experimental import pallas as pl
from jax.experimental.pallas import tpu as pltpu


_LANES = 128
_SUBLANES = 8
_VREG_ELEMS = _LANES * _SUBLANES          # 1024 elements per (8, 128) vreg
_NUM_CORE_SPLITS = 2                       # "parallel" split; ~2x on v7x (2 TCs)


# ----------------------------- Pallas kernel ------------------------------ #

def _sumsq_kernel(x_ref, o_ref, acc_ref):
    """Per-core partial sum of squares.

    x_ref:   (vregs_per_block, 8, 128) input tile, native dtype
    o_ref:   (1, 8, 128) f32 per-core partial output
    acc_ref: (1, 8, 128) f32 VMEM accumulator (lives across the reduction axis)
    """
    k = pl.program_id(1)

    @pl.when(k == 0)
    def _():
        acc_ref[...] = jnp.zeros_like(acc_ref)

    # Cast in-kernel (keeps bf16 in HBM; correct f32 math on v5e's VPU too).
    x = x_ref[...].astype(jnp.float32)
    # Reduce only along the leading (vreg-count) axis: a chain of (8, 128)
    # VPU adds.  No per-step XLU cross-lane reduce, no scalar serialization.
    acc_ref[...] += jnp.sum(x * x, axis=0, keepdims=True)

    @pl.when(k == pl.num_programs(1) - 1)
    def _():
        o_ref[...] = acc_ref[...]


def _sum_of_squares(params, *, max_block_vregs=None):
    """sum_p sum(p**2) over a list of arrays, via a tiled Pallas reduction."""
    params = [p for p in params if int(p.size) > 0]
    if not params:
        return jnp.float32(0.0)

    dtype = jnp.result_type(*[p.dtype for p in params])
    n = sum(int(p.size) for p in params)

    # ~1 MiB of input per grid step (double-buffered -> ~2 MiB VMEM, fine on
    # every TPU generation incl. v7x's 64 MiB); shrink for small inputs.
    itemsize = jnp.dtype(dtype).itemsize
    if max_block_vregs is None:
        max_block_vregs = max(8, (1 << 20) // (_VREG_ELEMS * itemsize))

    n_vregs = pl.cdiv(n, _VREG_ELEMS)
    vregs_per_block = max(1, min(max_block_vregs,
                                 pl.cdiv(n_vregs, _NUM_CORE_SPLITS)))
    blocks_per_core = pl.cdiv(n_vregs, _NUM_CORE_SPLITS * vregs_per_block)
    total_elems = _NUM_CORE_SPLITS * blocks_per_core * vregs_per_block * _VREG_ELEMS

    # One-pass flatten + tail pad (zeros contribute 0 to the sum).  No eager
    # f32 upcast: the kernel casts per-tile after the DMA.
    pieces = [p.reshape(-1).astype(dtype) for p in params]
    pad = total_elems - n
    if pad:
        pieces.append(jnp.zeros((pad,), dtype))
    x = jnp.concatenate(pieces).reshape(-1, _SUBLANES, _LANES)

    partials = pl.pallas_call(
        _sumsq_kernel,
        out_shape=jax.ShapeDtypeStruct(
            (_NUM_CORE_SPLITS, _SUBLANES, _LANES), jnp.float32),
        grid_spec=pltpu.PrefetchScalarGridSpec(
            num_scalar_prefetch=0,
            grid=(_NUM_CORE_SPLITS, blocks_per_core),
            in_specs=[pl.BlockSpec(
                (vregs_per_block, _SUBLANES, _LANES),
                lambda c, k: (c * blocks_per_core + k, 0, 0))],
            out_specs=pl.BlockSpec(
                (1, _SUBLANES, _LANES), lambda c, k: (c, 0, 0)),
            scratch_shapes=[pltpu.VMEM((1, _SUBLANES, _LANES), jnp.float32)],
        ),
        compiler_params=pltpu.CompilerParams(
            dimension_semantics=("parallel", "arbitrary")),
    )(x)

    # Final tiny (2, 8, 128) -> scalar reduce done once, outside the kernel.
    return jnp.sum(partials)


# ------------------------------- Module port ------------------------------ #

class BaseModelPallas:
    """JAX/Pallas port of cogkge BaseModel."""

    def __init__(self, model_name="BaseModel", penalty_weight=0.0):
        self.model_loss = None
        self.model_metric = None
        self.model_negative_sampler = None
        self.model_name = model_name
        self.penalty_weight = penalty_weight
        self.init_description_adapter = False
        self.init_type_adapter = False
        self.init_time_adapter = False
        self.init_graph_adapter = False
        self.time_dict_len = 0
        self.nodetype_dict_len = 0
        self.relationtype_dict_len = 0
        # Parameters live in a plain dict (BaseModel declares none itself;
        # KGE subclasses register embedding tables here).
        self.params = {}

    def set_model_config(self, model_loss=None, model_metric=None,
                         model_negative_sampler=None, model_device="tpu",
                         time_dict_len=0, nodetype_dict_len=0,
                         relationtype_dict_len=0):
        self.model_loss = model_loss
        self.model_metric = model_metric
        self.model_negative_sampler = model_negative_sampler
        self.model_device = model_device
        self.time_dict_len = time_dict_len
        self.nodetype_dict_len = nodetype_dict_len
        self.relationtype_dict_len = relationtype_dict_len

    def _reset_param(self):
        pass

    def forward(self, data):
        # torch forward() is `pass` -> no-op.
        # TODO(synk): BaseModel.forward has no computation to translate.
        return None

    def __call__(self, data):
        return self.forward(data)

    def penalty(self):
        """penalty_weight * sum_p sum(p**2); reduction done in Pallas."""
        if not self.params:
            return jnp.float32(self.penalty_weight) * jnp.float32(0.0)
        return (jnp.float32(self.penalty_weight)
                * _sum_of_squares(list(self.params.values())))

    def data_to_device(self, data):
        return [jax.device_put(item) for item in data]

    def loss(self, data):
        pass

    def metric(self, data):
        pass

    def get_realation_embedding(self, relation_ids):
        pass

    def get_entity_embedding(self, entity_ids):
        pass

    def get_triplet_embedding(self, data):
        pass


# --------------------------------- Demo ----------------------------------- #

if __name__ == "__main__":
    key = jax.random.PRNGKey(0)
    k1, k2, k3 = jax.random.split(key, 3)

    model = BaseModelPallas(model_name="BaseModel", penalty_weight=0.01)
    model.set_model_config(model_device="tpu", time_dict_len=0,
                           nodetype_dict_len=0, relationtype_dict_len=0)

    # Deterministic synthetic parameters (the shapes a KGE subclass would
    # register): small entity/relation embedding tables.
    model.params = {
        "entity_embedding": jax.random.normal(k1, (16, 32), jnp.float32),
        "relation_embedding": jax.random.normal(k2, (8, 32), jnp.float32),
    }

    # forward() is a no-op per the reference module.
    _ = model.forward(None)

    # Hot path: Pallas sum-of-squares penalty.
    pen = model.penalty()
    pen = jax.block_until_ready(pen)

    # Pure-JAX reference check.
    ref = jnp.float32(model.penalty_weight) * sum(
        jnp.sum(p.astype(jnp.float32) ** 2) for p in model.params.values())
    assert jnp.allclose(pen, ref, rtol=1e-5, atol=1e-5), (pen, ref)

    # Extra check: force a multi-step reduction grid (grid = (2, >1)) to
    # exercise the accumulator init / accumulate / finalize path.
    big = jax.random.normal(k3, (512, 64), jnp.float32)
    got = jax.block_until_ready(_sum_of_squares([big], max_block_vregs=2))
    ref2 = jnp.sum(big.astype(jnp.float32) ** 2)
    assert jnp.allclose(got, ref2, rtol=1e-5, atol=1e-4), (got, ref2)

    print("KERNEL_OK")
</pallas_src>

<mosaic_0001>
module attributes {stable_mosaic.version = 11 : i64} {
  func.func @_sumsq_kernel(%arg0: i32, %arg1: i32, %arg2: memref<1x8x128xf32, #tpu.memory_space<vmem>>, %arg3: memref<1x8x128xf32, #tpu.memory_space<vmem>>, %arg4: memref<1x8x128xf32, #tpu.memory_space<vmem>>) attributes {dimension_semantics = [#tpu.dimension_semantics<parallel>, #tpu.dimension_semantics<arbitrary>], iteration_bounds = array<i64: 2, 1>, scalar_prefetch = 0 : i64, scratch_operands = 1 : i64, tpu.core_type = #tpu.core_type<tc>, window_params = [{transform_indices = @transform_0, window_bounds = array<i64: 1, 8, 128>}, {transform_indices = @transform_1, window_bounds = array<i64: 1, 8, 128>}]} {
    %c0_i32 = arith.constant 0 : i32
    %0 = arith.cmpi eq, %arg1, %c0_i32 : i32
    %1 = arith.extui %0 : i1 to i32
    %c0_i32_0 = arith.constant 0 : i32
    %2 = arith.cmpi ne, %1, %c0_i32_0 : i32
    scf.if %2 {
      %cst_11 = arith.constant 0.000000e+00 : f32
      %13 = vector.broadcast %cst_11 : f32 to vector<1x8x128xf32>
      %c0_12 = arith.constant 0 : index
      %c0_13 = arith.constant 0 : index
      %c0_14 = arith.constant 0 : index
      %14 = vector.load %arg4[%c0_12, %c0_13, %c0_14] : memref<1x8x128xf32, #tpu.memory_space<vmem>>, vector<1x8x128xf32>
      tpu.vector_store %arg4[%c0_12, %c0_13, %c0_14], %13 {strides = array<i32>} : memref<1x8x128xf32, #tpu.memory_space<vmem>>, vector<1x8x128xf32>,
    } else {
    }
    %c0 = arith.constant 0 : index
    %c0_1 = arith.constant 0 : index
    %c0_2 = arith.constant 0 : index
    %3 = vector.load %arg2[%c0, %c0_1, %c0_2] : memref<1x8x128xf32, #tpu.memory_space<vmem>>, vector<1x8x128xf32>
    %c0_3 = arith.constant 0 : index
    %c0_4 = arith.constant 0 : index
    %c0_5 = arith.constant 0 : index
    %4 = vector.load %arg4[%c0_3, %c0_4, %c0_5] : memref<1x8x128xf32, #tpu.memory_space<vmem>>, vector<1x8x128xf32>
    %5 = arith.mulf %3, %3 : vector<1x8x128xf32>
    %cst = arith.constant dense<0.000000e+00> : vector<8x128xf32>
    %6 = vector.multi_reduction <add>, %5, %cst [0] : vector<1x8x128xf32> to vector<8x128xf32>
    %7 = vector.shape_cast %6 : vector<8x128xf32> to vector<1x8x128xf32>
    %8 = arith.addf %4, %7 : vector<1x8x128xf32>
    %c0_6 = arith.constant 0 : index
    %c0_7 = arith.constant 0 : index
    %c0_8 = arith.constant 0 : index
    %9 = vector.load %arg4[%c0_6, %c0_7, %c0_8] : memref<1x8x128xf32, #tpu.memory_space<vmem>>, vector<1x8x128xf32>
    tpu.vector_store %arg4[%c0_6, %c0_7, %c0_8], %8 {strides = array<i32>} : memref<1x8x128xf32, #tpu.memory_space<vmem>>, vector<1x8x128xf32>,
    %c0_i32_9 = arith.constant 0 : i32
    %10 = arith.cmpi eq, %arg1, %c0_i32_9 : i32
    %11 = arith.extui %10 : i1 to i32
    %c0_i32_10 = arith.constant 0 : i32
    %12 = arith.cmpi ne, %11, %c0_i32_10 : i32
    scf.if %12 {
      %c0_11 = arith.constant 0 : index
      %c0_12 = arith.constant 0 : index
      %c0_13 = arith.constant 0 : index
      %13 = vector.load %arg4[%c0_11, %c0_12, %c0_13] : memref<1x8x128xf32, #tpu.memory_space<vmem>>, vector<1x8x128xf32>
      %c0_14 = arith.constant 0 : index
      %c0_15 = arith.constant 0 : index
      %c0_16 = arith.constant 0 : index
      %14 = vector.load %arg3[%c0_14, %c0_15, %c0_16] : memref<1x8x128xf32, #tpu.memory_space<vmem>>, vector<1x8x128xf32>
      tpu.vector_store %arg3[%c0_14, %c0_15, %c0_16], %13 {strides = array<i32>} : memref<1x8x128xf32, #tpu.memory_space<vmem>>, vector<1x8x128xf32>,
    } else {
    }
    return
  }
  func.func @transform_0(%arg0: i32, %arg1: i32) -> (i32, i32, i32) {
    %c1_i32 = arith.constant 1 : i32
    %0 = arith.muli %arg0, %c1_i32 : i32
    %1 = arith.addi %0, %arg1 : i32
    %c0_i32 = arith.constant 0 : i32
    %c0_i32_0 = arith.constant 0 : i32
    %c0_i32_1 = arith.constant 0 : i32
    return %1, %c0_i32, %c0_i32_0 : i32, i32, i32
  }
  func.func @transform_1(%arg0: i32, %arg1: i32) -> (i32, i32, i32) {
    %c0_i32 = arith.constant 0 : i32
    %c0_i32_0 = arith.constant 0 : i32
    %c0_i32_1 = arith.constant 0 : i32
    return %arg0, %c0_i32, %c0_i32_0 : i32, i32, i32
  }
}

</mosaic_0001>

<bundles_post_ra>
// kernel: tpu_custom_call.1
= control target key start
LH: loop header
LB: loop body
LE: loop exit
PB: predicated region body
PF: predicated region fallthrough
CT: control target
= control target key end

     0   :  { %6 = vsyncpa [#allocation4], 0  ;;  %s588_s0 = inlined_call_operand.hbm [shape: f32[2,8,128], index: 0, kind: input, shape index: {}]   ;;  %s589_s1 = inlined_call_operand.hbm [shape: f32[2,8,128], index: 1, kind: output, shape index: {}]  }
   0x1   :  { %8 = vsyncpa [#allocation4 + $0x1], 0 }
   0x2   :  { %9 = vsyncpa [#allocation5], 0 }
   0x3   :  { %11 = vsyncpa [#allocation5 + $0x1], 0  ;;  %s454_s6 = smov 0   ;;  %s456_s7 = smov 0  }
   0x4   :  { %s458_s8 = smov 0   ;;  %s460_s9 = smov 0  }
   0x5   :  { %s462_s10 = smov 0   ;;  %s464_s11 = smov 0  }
   0x6 LB: > { %s257_s12 = sadd.s32 4294967295, %s440_s11   ;;  %s258_s13 = sadd.s32 4294967294, %s440_s11   ;;  %s440_s11 = sphi %s464_s11, %s17_s11   ;;  %s436_s10 = sphi %s462_s10, %s601_s10   ;;  %s432_s9 = sphi %s460_s9, %s600_s9   ;;  %s428_s8 = sphi %s458_s8, %s599_s8   ;;  %s424_s7 = sphi %s456_s7, %s598_s7   ;;  %s420_s6 = sphi %s454_s6, %s597_s6  }
   0x7   : > { %s29_s14 = sadd.s32 1, %s436_s10  ;;  %s38_s15 = sadd.s32 1, %s428_s8 }
   0x8   : > { %p31_p0 = scmp.ge.s32.totalorder %s29_s14, 2  ;;  %p45_p1 = scmp.ne.s32.totalorder %s428_s8, %s424_s7 }
   0x9   : > { %p46_p2 = scmp.eq.s32.totalorder %s440_s11, 0  ;;  %p51_p3 = scmp.ne.s32.totalorder %s424_s7, %s420_s6 }
   0xa   : > { %s603_s14 = smov (%p31_p0, %s29_s14), 0  ;;  %p52_p5 = scmp.eq.s32.totalorder %s257_s12, 0 }
   0xb   : > { %p495_p4 = por %p46_p2, %p45_p1  ;;  %s35_s17 = ssub.s32 %s436_s10, %s603_s14 }
   0xc   : > { %p75_p6 = scmp.eq.s32.totalorder %s257_s12, 1  ;;  %p36_p7 = scmp.eq.s32.totalorder %s35_s17, 0 }
   0xd   : > { %p501_p8 = por %p52_p5, %p51_p3  ;;  %p81_p10 = scmp.eq.s32.totalorder %s258_s13, 1 }
   0xe   : > { %p505_p9 = por %p75_p6, %p45_p1  ;;  %p282_p13 = scmp.lt.s32.totalorder %s440_s11, 2 }
   0xf   : > { %s510_s20 = scalar_select %p36_p7, %s428_s8, %s38_s15  }
  0x10   : > { %p512_p11 = por %p81_p10, %p51_p3  ;;  %s101_s22 = sand.u32 1, %s428_s8  }
  0x11   : > { %s261_s23 = sshll.u32 %s101_s22, 3  ;;  %s262_s24 = sshll.u32 %s436_s10, 7 }
  0x12   : > { %s593_s21 = scalar_select %p512_p11, 1, 0 }
  0x13   : > { %s111_s27 = scalar_lea.hbm %s588_s0, %s262_s24  ;;  %s105_s28 = scalar_lea.vmem [#allocation3], %s261_s23 }
  0x14   : > { %s113_s29 = sshll.u32 %s105_s28, 4  ;;  %p525_p0 = pnand %p282_p13, %p495_p4  ;;  %s114_s29 = int_to_ptr.vmem [resolvable:$true] %s113_s29 }
  0x15   : > { %p263_p1 = scmp.ge.s32.totalorder %s440_s11, 1  ;;  %p118_p2 = scmp.lt.s32.totalorder %s440_s11, 3 }
  0x16   : > { %s102_s2 = scalar_lea.sflag [#allocation4], %s101_s22  ;;  %p334_p3 = pneg %p525_p0 }
  0x17   : > { %s345_s3 = scalar_lea.vmem %s114_s29, 128  ;;  %s442_s4 = smov [#allocation3]  }
  0x18   : > { %p346_p5 = scmp.ne.s32.totalorder %s114_s29, %s345_s3  ;;  %s350_s5 = sshll.u32 %s442_s4, 4  ;;  %s351_s5 = int_to_ptr.vmem [resolvable:$false] %s350_s5 }
  0x19   : > { %s352_s12 = scalar_lea.vmem %s351_s5, 256  ;;  %p353_p10 = scmp.lt.s32.totalorder %s114_s29, %s351_s5 }
  0x1a   : > { %p348_p6 = pnand %p346_p5, %p334_p3  ;;  %p354_p12 = scmp.lt.s32.totalorder %s352_s12, %s345_s3 }
  0x1c   : > { %p349_p7 = pneg %p348_p6  ;;  %p355_p4 = por %p354_p12, %p353_p10 }
  0x1e   : > { %p356_p13 = pnand %p355_p4, %p349_p7 }
  0x20   : > { %359 = shalt.err (!%p356_p13)
}
  0x21   : > { %277 = dma.hbm_to_vmem [thread:$0]  (!%p525_p0), %s111_s27, 128, %s114_s29, %s102_s2  }
  0x22   : > { %p119_p11 = pnand %p263_p1, %p118_p2 }
  0x23   : > { %s540_s13 = sand.u32 (!%p119_p11), 1, %s424_s7  }
  0x24   : > { %122 = sbr.rel (%p119_p11) target bundleno = 66 (0x42), region = 24  ;;  %s264_s15 = sshll.u32 (!%p119_p11), %s540_s13, 3 }
  0x25   : > { %s125_s16 = scalar_lea.sflag (!%p119_p11), [#allocation4], %s540_s13  ;;  %s128_s17 = scalar_lea.vmem (!%p119_p11), [#allocation3], %s264_s15 }
  0x29   : > { %411 = dma.done.wait (%p501_p8), %s125_s16, 128  }
  0x2a   : > { %413 = vsyncadd (%p501_p8), %s125_s16, 4294967168  ;;  %s146_s22 = scalar_lea.vmem [#allocation6], %s264_s15  ;;  %s267_s24 = sshll.u32 %s432_s9, 7  ;;  %v153_v0 = vld [vmem:[%s128_s17] sm:$0xff] }
  0x2b   : > { %s178_s23 = sshll.u32 %s146_s22, 4  ;;  %v155_v1 = vmul.f32 %v153_v0, %v153_v0  ;;  %s176_s27 = scalar_lea.hbm %s589_s1, %s267_s24  ;;  %s179_s23 = int_to_ptr.vmem [resolvable:$true] %s178_s23 }
  0x2c   : > { %s165_s28 = scalar_lea.sflag [#allocation5], %s540_s13  ;;  %s360_s29 = scalar_lea.vmem %s179_s23, 128 }
  0x2d   : > { %163 = vst [vmem:[%s146_s22] sm:$0xff] %v155_v1  ;;  %p361_p11 = scmp.ne.s32.totalorder %s179_s23, %s360_s29  ;;  %s443_s18 = smov [#allocation6]  }
  0x2e   : > { %s364_s30 = sshll.u32 %s443_s18, 4  ;;  %s365_s30 = int_to_ptr.vmem [resolvable:$false] %s364_s30 }
  0x2f   : > { %p362_p12 = pnand %p361_p11, %p505_p9  ;;  %s366_s2 = scalar_lea.vmem %s365_s30, 256 }
  0x30   : > { %p367_p0 = scmp.lt.s32.totalorder %s179_s23, %s365_s30  ;;  %p368_p1 = scmp.lt.s32.totalorder %s366_s2, %s360_s29 }
  0x31   : > { %p363_p8 = pneg %p362_p12 }
  0x32   : > { %p369_p2 = por %p368_p1, %p367_p0 }
  0x34   : > { %p370_p3 = pnand %p369_p2, %p363_p8 }
  0x36   : > { %373 = shalt.err (!%p370_p3)
}
  0x37   : > { %s374_s9 = scalar_lea.hbm %s176_s27, 128  ;;  %s378_s5 = scalar_lea.hbm %s589_s1, 256 }
  0x38   : > { %p375_p5 = scmp.ne.s32.totalorder %s176_s27, %s374_s9  ;;  %p379_p10 = scmp.lt.s32.totalorder %s176_s27, %s589_s1 }
  0x39   : > { %p380_p4 = scmp.lt.s32.totalorder %s378_s5, %s374_s9 }
  0x3a   : > { %p376_p6 = pnand %p375_p5, %p505_p9 }
  0x3b   : > { %p381_p13 = por %p380_p4, %p379_p10 }
  0x3c   : > { %p377_p7 = pneg %p376_p6 }
  0x3e   : > { %p382_p11 = pnand %p381_p13, %p377_p7 }
  0x40   : > { %385 = shalt.err (!%p382_p11)
}
  0x41   : > { %272 = dma.vmem_to_hbm [thread:$0]  (%p505_p9), %s179_s23, 128, %s176_s27, %s165_s28  }
  0x42 PF: > { %s190_s15 = sand.u32 1, %s420_s6   ;;  %p595_p12 = scmp.ne.s32.totalorder %s593_s21, 0 }
  0x43   : > { %p596_p8 = scmp.ge.s32.totalorder %s440_s11, 2  ;;  %s191_s16 = scalar_lea.sflag [#allocation5], %s190_s15 }
  0x45   : > { %p279_p0 = pnand %p596_p8, %p595_p12 }
  0x47   : > { %p280_p1 = pneg %p279_p0 }
  0x49   : > { %415 = dma.done.wait (%p280_p1), %s191_s16, 128  }
  0x4a   : > { %417 = vsyncadd (%p280_p1), %s191_s16, 4294967168  ;;  %s17_s11 = sadd.s32 1, %s440_s11   ;;  %s597_s6 = smov %s424_s7 }
  0x4b   : > { %p14_p2 = scmp.ge.s32.totalorder %s17_s11, 4   ;;  %s598_s7 = smov %s428_s8 }
  0x4c   : > { %s599_s8 = smov %s510_s20  ;;  %s600_s9 = smov %s436_s10 }
  0x4d   : > { %s601_s10 = smov %s603_s14  ;;  %16 = sbr.rel (!%p14_p2) target bundleno = 6 (0x6), region = 77 }
  0x52   :  { %196 = vsyncpa [#allocation4], 1 }
  0x53   :  { %198 = vsyncpa [#allocation4 + $0x1], 1 }
  0x54   :  { %199 = vsyncpa [#allocation5], 1 }
  0x55   :  { %201 = vsyncpa [#allocation5 + $0x1], 1 }

</bundles_post_ra>
